<compile_context>
chip_gen: v7x
topology: tpu7x:2x2x1
jax: 0.10.0
libtpu: 0.0.40
codegen_flags: <defaults>
</compile_context>

<pallas_src>
import functools

import jax
import jax.numpy as jnp
from jax.experimental import pallas as pl
from jax.experimental.pallas import tpu as pltpu


def _conv2d_relu_kernel(w_ref, p_ref, b_ref, o_ref, *, block_n):
    # w_ref: (C_out, K*)          flattened OIHW weights (compute dtype)
    # p_ref: (block_n, K*, P)     im2col patches, P = OH*OW (compute dtype)
    # b_ref: (C_out, 1)           bias, f32 (broadcast over the lane dim)
    # o_ref: (block_n, C_out, P)  output slab (already NCHW-flattened)
    w = w_ref[...]
    b = b_ref[...].astype(jnp.float32)
    for i in range(block_n):  # static, small (images in this grid step)
        acc = jnp.dot(w, p_ref[i], preferred_element_type=jnp.float32)  # (C_out, P)
        o_ref[i] = jnp.maximum(acc + b, 0.0).astype(o_ref.dtype)


def conv2d_block(x, weight, bias, *, stride=1, padding=0,
                 compute_dtype=jnp.bfloat16, images_per_block=None):
    """Pallas forward of Conv2dBlock: relu(conv2d(x, weight, bias)).

    x:      (N, C_in, H, W)       NCHW (PyTorch layout)
    weight: (C_out, C_in, KH, KW) OIHW (PyTorch layout)
    bias:   (C_out,)
    returns (N, C_out, OH, OW)    NCHW
    """
    N, C_in, H, W = x.shape
    C_out, C_in_w, KH, KW = weight.shape
    assert C_in_w == C_in
    OH = (H + 2 * padding - KH) // stride + 1
    OW = (W + 2 * padding - KW) // stride + 1
    P = OH * OW
    Kstar = C_in * KH * KW

    # ---- im2col once in XLA: (N, K*, P) with feature order (C_in, KH, KW),
    # matching weight.reshape(C_out, C_in*KH*KW).
    x_pad = jnp.pad(x, ((0, 0), (0, 0), (padding, padding), (padding, padding)))
    cols = []
    for kh in range(KH):
        for kw in range(KW):
            win = x_pad[:, :, kh:kh + stride * (OH - 1) + 1:stride,
                              kw:kw + stride * (OW - 1) + 1:stride]
            cols.append(win.reshape(N, C_in, P))
    patches = jnp.stack(cols, axis=2).reshape(N, Kstar, P).astype(compute_dtype)
    w_flat = weight.reshape(C_out, Kstar).astype(compute_dtype)
    b_col = bias.reshape(C_out, 1).astype(jnp.float32)

    # ---- images per grid step: amortize the ~0.35us/step overhead but keep
    # >= 2 grid steps (v7x has 2 TensorCores) and a small input block.
    if images_per_block is None:
        bytes_per_image = Kstar * P * jnp.dtype(compute_dtype).itemsize
        budget = 2 * 1024 * 1024
        bn = max(1, min(N // 2 if N >= 2 else 1, budget // max(1, bytes_per_image)))
        while N % bn:
            bn -= 1
        images_per_block = max(1, bn)
    block_n = images_per_block
    assert N % block_n == 0
    grid = (N // block_n,)

    out_dtype = x.dtype
    block_in_bytes = block_n * Kstar * P * jnp.dtype(compute_dtype).itemsize
    block_out_bytes = block_n * C_out * P * jnp.dtype(out_dtype).itemsize
    w_bytes = C_out * Kstar * jnp.dtype(compute_dtype).itemsize
    vmem_limit = int(min(64 * 1024 * 1024,
                         max(16 * 1024 * 1024,
                             4 * (block_in_bytes + block_out_bytes) + 2 * w_bytes)))

    cost = pl.CostEstimate(
        flops=2 * N * C_out * Kstar * P,
        transcendentals=0,
        bytes_accessed=(patches.size * patches.dtype.itemsize
                        + w_flat.size * w_flat.dtype.itemsize
                        + b_col.size * 4
                        + N * C_out * P * jnp.dtype(out_dtype).itemsize))

    kernel = functools.partial(_conv2d_relu_kernel, block_n=block_n)

    out = pl.pallas_call(
        kernel,
        out_shape=jax.ShapeDtypeStruct((N, C_out, P), out_dtype),
        grid=grid,
        in_specs=[
            pl.BlockSpec((C_out, Kstar), lambda n: (0, 0)),          # weights
            pl.BlockSpec((block_n, Kstar, P), lambda n: (n, 0, 0)),  # im2col patches
            pl.BlockSpec((C_out, 1), lambda n: (0, 0)),              # bias
        ],
        out_specs=pl.BlockSpec((block_n, C_out, P), lambda n: (n, 0, 0)),
        compiler_params=pltpu.CompilerParams(
            dimension_semantics=("parallel",),
            vmem_limit_bytes=vmem_limit),
        cost_estimate=cost,
    )(w_flat, patches, b_col)

    # Output slab is already NCHW; just reshape (no transpose, no HBM round trip).
    return out.reshape(N, C_out, OH, OW)


def conv2d_block_ref(x, weight, bias, *, stride=1, padding=0):
    """Pure-JAX reference mirroring the PyTorch forward (conv2d + relu)."""
    y = jax.lax.conv_general_dilated(
        x, weight,
        window_strides=(stride, stride),
        padding=[(padding, padding), (padding, padding)],
        dimension_numbers=("NCHW", "OIHW", "NCHW"),
        precision=jax.lax.Precision.HIGHEST)
    y = y + bias[None, :, None, None]
    return jnp.maximum(y, 0.0)


if __name__ == "__main__":
    key = jax.random.PRNGKey(0)
    kx, kw, kb = jax.random.split(key, 3)

    # Conv2dBlock(in_channels=4, out_channels=32, kernel_size=3, stride=1, padding=1)
    N, C_in, H, W = 2, 4, 16, 16
    C_out, K = 32, 3
    stride, padding = 1, 1

    x = jax.random.normal(kx, (N, C_in, H, W), dtype=jnp.float32)
    fan_in = C_in * K * K
    weight = jax.random.normal(kw, (C_out, C_in, K, K),
                               dtype=jnp.float32) * (2.0 / fan_in) ** 0.5
    bias = jax.random.normal(kb, (C_out,), dtype=jnp.float32) * 0.1

    y_ref = conv2d_block_ref(x, weight, bias, stride=stride, padding=padding)
    assert y_ref.shape == (N, C_out, H, W)

    # f32-operand path (tight numerics check): jit so the im2col layout ops fuse.
    fwd_f32 = jax.jit(functools.partial(conv2d_block, stride=stride,
                                        padding=padding,
                                        compute_dtype=jnp.float32))
    y32 = jax.block_until_ready(fwd_f32(x, weight, bias))
    assert y32.shape == y_ref.shape
    err32 = float(jnp.max(jnp.abs(y32 - y_ref)))
    assert jnp.allclose(y32, y_ref, atol=1e-3, rtol=1e-3), f"f32 mismatch {err32}"

    # bf16 MXU path (perf default on v5e/v6e/v7x); f32 accumulate + f32 epilogue.
    fwd_bf16 = jax.jit(functools.partial(conv2d_block, stride=stride,
                                         padding=padding,
                                         compute_dtype=jnp.bfloat16))
    ybf = jax.block_until_ready(fwd_bf16(x, weight, bias))
    errbf = float(jnp.max(jnp.abs(ybf - y_ref)))
    assert jnp.allclose(ybf, y_ref, atol=5e-2, rtol=5e-2), f"bf16 mismatch {errbf}"

    print("KERNEL_OK")
</pallas_src>

<mosaic_0001>
module attributes {stable_mosaic.version = 11 : i64} {
  func.func @_conv2d_relu_kernel(%arg0: i32, %arg1: memref<32x36xf32, #tpu.memory_space<vmem>>, %arg2: memref<1x36x256xf32, #tpu.memory_space<vmem>>, %arg3: memref<32x1xf32, #tpu.memory_space<vmem>>, %arg4: memref<1x32x256xf32, #tpu.memory_space<vmem>>) attributes {dimension_semantics = [#tpu.dimension_semantics<parallel>], iteration_bounds = array<i64: 2>, scalar_prefetch = 0 : i64, scratch_operands = 0 : i64, tpu.core_type = #tpu.core_type<tc>, window_params = [{pipeline_mode = #tpu.pipeline_mode<synchronous>, transform_indices = @transform_0, window_bounds = array<i64: 32, 36>}, {transform_indices = @transform_1, window_bounds = array<i64: 1, 36, 256>}, {pipeline_mode = #tpu.pipeline_mode<synchronous>, transform_indices = @transform_2, window_bounds = array<i64: 32, 1>}, {transform_indices = @transform_3, window_bounds = array<i64: 1, 32, 256>}]} {
    %c0 = arith.constant 0 : index
    %c0_0 = arith.constant 0 : index
    %0 = vector.load %arg1[%c0, %c0_0] : memref<32x36xf32, #tpu.memory_space<vmem>>, vector<32x36xf32>
    %c0_1 = arith.constant 0 : index
    %c0_2 = arith.constant 0 : index
    %1 = vector.load %arg3[%c0_1, %c0_2] : memref<32x1xf32, #tpu.memory_space<vmem>>, vector<32x1xf32>
    %c0_3 = arith.constant 0 : index
    %c0_4 = arith.constant 0 : index
    %c0_5 = arith.constant 0 : index
    %2 = vector.load %arg2[%c0_3, %c0_4, %c0_5] : memref<1x36x256xf32, #tpu.memory_space<vmem>>, vector<1x36x256xf32>
    %3 = vector.shape_cast %2 : vector<1x36x256xf32> to vector<36x256xf32>
    %cst = arith.constant dense<0.000000e+00> : vector<32x256xf32>
    %4 = tpu.matmul %0, %3, %cst {dimension_numbers = #tpu.dot_dimension_numbers<[1], [0], [0], [1], [0, 0, 1, 1], [], []>} : vector<32x36xf32>, vector<36x256xf32>, vector<32x256xf32> -> vector<32x256xf32>
    %5 = vector.broadcast %1 : vector<32x1xf32> to vector<32x256xf32>
    %6 = arith.addf %4, %5 : vector<32x256xf32>
    %cst_6 = arith.constant 0.000000e+00 : f32
    %7 = vector.broadcast %cst_6 : f32 to vector<32x256xf32>
    %8 = arith.maximumf %6, %7 : vector<32x256xf32>
    %c0_7 = arith.constant 0 : index
    %c0_8 = arith.constant 0 : index
    %c0_9 = arith.constant 0 : index
    %9 = vector.load %arg4[%c0_7, %c0_8, %c0_9] : memref<1x32x256xf32, #tpu.memory_space<vmem>>, vector<1x32x256xf32>
    %10 = vector.shape_cast %9 : vector<1x32x256xf32> to vector<32x256xf32>
    %11 = vector.shape_cast %8 : vector<32x256xf32> to vector<1x32x256xf32>
    tpu.vector_store %arg4[%c0_7, %c0_8, %c0_9], %11 {strides = array<i32>} : memref<1x32x256xf32, #tpu.memory_space<vmem>>, vector<1x32x256xf32>,
    return
  }
  func.func @transform_0(%arg0: i32) -> (i32, i32) {
    %c0_i32 = arith.constant 0 : i32
    %c0_i32_0 = arith.constant 0 : i32
    %c0_i32_1 = arith.constant 0 : i32
    return %c0_i32, %c0_i32_0 : i32, i32
  }
  func.func @transform_1(%arg0: i32) -> (i32, i32, i32) {
    %c0_i32 = arith.constant 0 : i32
    %c0_i32_0 = arith.constant 0 : i32
    %c0_i32_1 = arith.constant 0 : i32
    return %arg0, %c0_i32, %c0_i32_0 : i32, i32, i32
  }
  func.func @transform_2(%arg0: i32) -> (i32, i32) {
    %c0_i32 = arith.constant 0 : i32
    %c0_i32_0 = arith.constant 0 : i32
    %c0_i32_1 = arith.constant 0 : i32
    return %c0_i32, %c0_i32_0 : i32, i32
  }
  func.func @transform_3(%arg0: i32) -> (i32, i32, i32) {
    %c0_i32 = arith.constant 0 : i32
    %c0_i32_0 = arith.constant 0 : i32
    %c0_i32_1 = arith.constant 0 : i32
    return %arg0, %c0_i32, %c0_i32_0 : i32, i32, i32
  }
}

</mosaic_0001>

<bundles_post_ra>
// kernel: conv2d_block.1
= control target key start
LH: loop header
LB: loop body
LE: loop exit
PB: predicated region body
PF: predicated region fallthrough
CT: control target
= control target key end

     0   :  { %s463_s12 = smov 0   ;;  %s508_s0 = inlined_call_operand.vmem [shape: f32[32,36], index: 0, kind: input, shape index: {}]   ;;  %s509_s1 = inlined_call_operand.vmem [shape: f32[2,36,256], index: 1, kind: input, shape index: {}]   ;;  %s510_s2 = inlined_call_operand.vmem [shape: f32[32,1], index: 2, kind: input, shape index: {}]   ;;  %s511_s3 = inlined_call_operand.vmem [shape: f32[2,32,256], index: 3, kind: output, shape index: {}]  }
   0x1 LB: > { %s389_s13 = sadd.s32 4294967295, %s439_s12   ;;  %p393_p0 = scmp.ge.s32.totalorder %s439_s12, 1  ;;  %s439_s12 = sphi %s463_s12, %s13_s12  }
   0x2   : > { %p137_p1 = scmp.lt.s32.totalorder %s439_s12, 3 }
   0x4   : > { %p138_p2 = pnand %p393_p0, %p137_p1 }
   0x5   : > { %p161_p3 = scmp.lt.s32.totalorder (!%p138_p2), %s389_s13, 1  ;;  %v441_v0 = vmov (!%p138_p2), 0.0   ;;  %v177_v1 = vld [vmem:[%s510_s2 + $0x10] sm:$0xff] (!%p138_p2)  ;;  %v442_v2 = vmov (!%p138_p2), 0   ;;  %v175_v3 = vld [vmem:[%s510_s2] sm:$0xff] (!%p138_p2)  ;;  %v178_v4 = vld [vmem:[%s510_s2 + $0x18] sm:$0xff] (!%p138_p2) }
   0x6   : > { %141 = sbr.rel (%p138_p2) target bundleno = 252 (0xfc), region = 32  ;;  %293 = vmatprep.mubr.f32.mxu0 (!%p138_p2), %v441_v0  ;;  %305 = vmatprep.mubr.f32.mxu1 (!%p138_p2), %v441_v0  ;;  %v176_v5 = vld [vmem:[%s510_s2 + $0x8] sm:$0xff] (!%p138_p2)  ;;  %vm222_vm0 = vcmask (!%p138_p2), 1043456   ;;  %v171_v20 = vld [vmem:[%s508_s0] sm:$0xff] (!%p138_p2)  ;;  %vm209_vm1 = vcmask (!%p138_p2), 293888   ;;  %v173_v21 = vld [vmem:[%s508_s0 + $0x10] sm:$0xff] (!%p138_p2) }
   0x7   : > { %432 = vset.pattern.permute.xlu1 (!%p138_p2), %v442_v2  ;;  %431 = vset.pattern.permute.xlu0 (!%p138_p2), %v442_v2  ;;  %v172_v22 = vld [vmem:[%s508_s0 + $0x8] sm:$0xff] (!%p138_p2)  ;;  %v174_v23 = vld [vmem:[%s508_s0 + $0x18] sm:$0xff] (!%p138_p2) }
   0x8   : > { %201 = vperm.xlu1 (!%p138_p2), %432, %v177_v1   ;;  %191 = vperm.xlu0 (!%p138_p2), %431, %v175_v3  }
   0xc   : > { %206 = vperm.xlu1 (!%p138_p2), %432, %v178_v4   ;;  %196 = vperm.xlu0 (!%p138_p2), %431, %v176_v5  }
   0xd   : > { %s513_s13 = smov (!%p161_p3, %s389_s13), 1 }
   0xe   : > { %s420_s18 = smul.u32 80, %s513_s13  ;;  %s405_s7 = sshll.u32 %s513_s13, 6 }
   0xf   : > { %s170_s10 = scalar_lea.vmem %s511_s3, %s405_s7 }
  0x10   : > { %s165_s25 = scalar_lea.vmem %s509_s1, %s420_s18 }
  0x11   : > { %v180_v6 = vld [vmem:[%s165_s25 + $0x8] sm:$0xff]  ;;  %v182_v7 = vld [vmem:[%s165_s25 + $0x18] sm:$0xff]  ;;  %v179_v8 = vld [vmem:[%s165_s25] sm:$0xff] }
  0x12   : > { %v406_v9 = vpack.c.bf16 %v182_v7, %v180_v6  ;;  %v181_v10 = vld [vmem:[%s165_s25 + $0x10] sm:$0xff]  ;;  %v184_v11 = vld [vmem:[%s165_s25 + $0x28] sm:$0xff]  ;;  %v186_v12 = vld [vmem:[%s165_s25 + $0x38] sm:$0xff] }
  0x13   : > { %v408_v13 = vpack.c.bf16 %v181_v10, %v179_v8  ;;  %v410_v14 = vpack.c.bf16 %v186_v12, %v184_v11  ;;  %v183_v15 = vld [vmem:[%s165_s25 + $0x20] sm:$0xff]  ;;  %v185_v16 = vld [vmem:[%s165_s25 + $0x30] sm:$0xff]  ;;  %v188_v18 = vld [vmem:[%s165_s25 + $0x48] sm:$0xf] }
  0x14   : > { %407 = vmatprep.subr.bf16.mxu0 %v406_v9  ;;  %414 = vmatprep.subr.bf16.mxu1 %v406_v9  ;;  %v412_v17 = vpack.c.bf16 %v185_v16, %v183_v15  ;;  %v187_v19 = vld [vmem:[%s165_s25 + $0x40] sm:$0xf] }
  0x15   : > { %409 = vmatpush1.bf16.msra.mxu0 %v408_v13  ;;  %417 = vmatpush1.bf16.msra.mxu1 %v408_v13 }
  0x16   : > { %411 = vmatprep.subr.bf16.mxu0 %v410_v14  ;;  %415 = vmatprep.subr.bf16.mxu1 %v410_v14 }
  0x19   : > { %413 = vmatpush1.bf16.msra.mxu0 %v412_v17  ;;  %418 = vmatpush1.bf16.msra.mxu1 %v412_v17 }
  0x1a   : > { %397 = vmatprep.subr.msk.mxu0 %vm222_vm0, %v188_v18  ;;  %416 = vmatprep.subr.msk.mxu1 %vm222_vm0, %v188_v18 }
  0x1d   : > { %398 = vmatpush1.msk.msra.mxu0 %vm222_vm0, %v187_v19  ;;  %419 = vmatpush1.msk.msra.mxu1 %vm222_vm0, %v187_v19 }
  0x1e   : > { %399 = vmatmul.mubr.msk.f32.vlgmr.msra.gmra.mrb[0].mxu0 %vm209_vm1, %v171_v20  ;;  %401 = vmatmul.mubr.msk.f32.vlgmr.msra.gmra.mrb[0].mxu1 %vm209_vm1, %v173_v21 }
  0x1f   : > { %299 = vmatprep.mubr.f32.mxu0 %v441_v0  ;;  %311 = vmatprep.mubr.f32.mxu1 %v441_v0 }
  0x22   : > { %400 = vmatmul.mubr.msk.f32.gmra.mrb[2].mxu0 %vm209_vm1, %v172_v22  ;;  %402 = vmatmul.mubr.msk.f32.gmra.mrb[2].mxu1 %vm209_vm1, %v174_v23 }
  0x87   : > { %v202_v24 = vpop.permute.xlu1 %201  ;;  %v192_v25 = vpop.permute.xlu0 %191 }
  0x8b   : > { %v207_v36 = vpop.permute.xlu1 %206  ;;  %v197_v37 = vpop.permute.xlu0 %196 }
  0xf1   : > { %v295_v26 = vpop.f32.mrb[0].mxu0  ;;  %v307_v27 = vpop.f32.mrb[0].mxu1 }
  0xf2   : > { %v296_v28 = vadd.f32 %v295_v26, %v192_v25  ;;  %v308_v29 = vadd.f32 %v307_v27, %v202_v24  ;;  %v297_v30 = vpop.f32.mrb[1].mxu0  ;;  %v309_v31 = vpop.f32.mrb[1].mxu1 }
  0xf3   : > { %v298_v32 = vadd.f32 %v297_v30, %v192_v25  ;;  %v310_v33 = vadd.f32 %v309_v31, %v202_v24 }
  0xf4   : > { %v318_v34 = vmax.f32 %v296_v28, 0.0  ;;  %v322_v35 = vmax.f32 %v308_v29, 0.0 }
  0xf5   : > { %v319_v38 = vmax.f32 %v298_v32, 0.0  ;;  %v323_v39 = vmax.f32 %v310_v33, 0.0  ;;  %v301_v40 = vpop.f32.mrb[2].mxu0  ;;  %v313_v41 = vpop.f32.mrb[2].mxu1 }
  0xf6   : > { %326 = vst [vmem:[%s170_s10] sm:$0xff] %v318_v34  ;;  %330 = vst [vmem:[%s170_s10 + $0x20] sm:$0xff] %v322_v35  ;;  %v302_v42 = vadd.f32 %v301_v40, %v197_v37  ;;  %v314_v43 = vadd.f32 %v313_v41, %v207_v36  ;;  %v303_v44 = vpop.f32.mrb[3].mxu0  ;;  %v315_v45 = vpop.f32.mrb[3].mxu1 }
  0xf7   : > { %327 = vst [vmem:[%s170_s10 + $0x8] sm:$0xff] %v319_v38  ;;  %331 = vst [vmem:[%s170_s10 + $0x28] sm:$0xff] %v323_v39  ;;  %v304_v46 = vadd.f32 %v303_v44, %v197_v37  ;;  %v316_v47 = vadd.f32 %v315_v45, %v207_v36 }
  0xf8   : > { %v320_v48 = vmax.f32 %v302_v42, 0.0  ;;  %v324_v49 = vmax.f32 %v314_v43, 0.0 }
  0xf9   : > { %v321_v50 = vmax.f32 %v304_v46, 0.0  ;;  %v325_v51 = vmax.f32 %v316_v47, 0.0 }
  0xfa   : > { %328 = vst [vmem:[%s170_s10 + $0x10] sm:$0xff] %v320_v48  ;;  %332 = vst [vmem:[%s170_s10 + $0x30] sm:$0xff] %v324_v49 }
  0xfb   : > { %329 = vst [vmem:[%s170_s10 + $0x18] sm:$0xff] %v321_v50  ;;  %333 = vst [vmem:[%s170_s10 + $0x38] sm:$0xff] %v325_v51 }
  0xfc PF: > { %s13_s12 = sadd.s32 1, %s439_s12  }
  0xfd   : > { %p10_p4 = scmp.ge.s32.totalorder %s13_s12, 4  }
  0xff   :  { %12 = sbr.rel (!%p10_p4) target bundleno = 1 (0x1), region = 62 }

</bundles_post_ra>
